<compile_context>
chip_gen: v5e
topology: v5e:2x2
jax: 0.10.0
libtpu: 0.0.40
codegen_flags: <defaults>
</compile_context>

<pallas_src>
import jax
import jax.numpy as jnp
import numpy as np
from jax.experimental import pallas as pl
from jax.experimental.pallas import tpu as pltpu

INPUT_DIM = 9        # d^2
INPUT_OFF = 3        # d
HID_DIM = 32
OUT_DIM = 4
BATCH = 16
SET_SIZE = 16
LANE = 128           # lane width; final layer + output padded to this for unmasked stores
ROW_ALIGN = 16       # bf16 packs 16 rows/vreg -> every weight block starts on a 16-row boundary
ACT_COLS = 16        # activation slab lane width (max(INPUT_DIM, INPUT_OFF) padded to 16)
N_POOL_CHUNKS = -(-(BATCH * SET_SIZE) // LANE)   # K=128 chunks of the mean-pool contraction


# ----------------------------------------------------------------------------- static layout
def _w_layout():
    blocks = [
        ("wkm1", INPUT_DIM, INPUT_DIM * 2),
        ("wkm2o", INPUT_DIM * 2, HID_DIM),
        ("wf1", INPUT_OFF, HID_DIM),
        ("wf2", HID_DIM, HID_DIM),
    ]
    for c in range(N_POOL_CHUNKS):
        cols = min(LANE, BATCH * SET_SIZE - c * LANE)
        blocks.append((f"pool{c}", BATCH, cols))
    blocks += [
        ("wfr", HID_DIM, HID_DIM),     # wf3 @ wr1 (folded)
        ("wr2o", HID_DIM, HID_DIM),    # wr2 @ wo1[h:] (folded)
        ("wo2p", HID_DIM, LANE),       # wo2 zero-padded to 128 lanes
    ]
    off, r = {}, 0
    for name, rows, cols in blocks:
        off[name] = (r, rows, cols)
        r += rows + ((-rows) % ROW_ALIGN)
    return off, r


W_OFF, W_ROWS = _w_layout()

_B_NAMES = [("bkm1", INPUT_DIM * 2), ("bf1", HID_DIM), ("bf2", HID_DIM),
            ("bfr", HID_DIM), ("bo1f", HID_DIM), ("bo2p", LANE)]
B_OFF = {name: (i, cols) for i, (name, cols) in enumerate(_B_NAMES)}
B_ROWS = ((len(_B_NAMES) + 7) // 8) * 8      # pad f32 bias slab rows to a sublane multiple


# ----------------------------------------------------------------------------- kernel
def _make_kernel(batch, set_size):
    f32 = jnp.float32
    bf16 = jnp.bfloat16
    n_rows = batch * set_size

    def kernel(acts_ref, w_ref, b_ref, out_ref):
        def w(name):                                  # bf16 weight block (static slab slice)
            r0, rows, cols = W_OFF[name]
            return w_ref[r0:r0 + rows, 0:cols]

        def b(name):                                  # f32 bias row, shape (1, cols)
            r0, cols = B_OFF[name]
            return b_ref[r0:r0 + 1, 0:cols]

        def mm(x_bf16, name):                         # bf16 x bf16 MXU matmul, f32 accumulation
            return jnp.dot(x_bf16, w(name), preferred_element_type=f32)

        relu = lambda v: jnp.maximum(v, 0.0)

        f_d = acts_ref[0:batch, 0:INPUT_DIM]                      # bf16 (B, 9)
        f_o = acts_ref[batch:batch + n_rows, 0:INPUT_OFF]         # bf16 (B*S, 3)

        # ---- MLP_km branch (wkm2 pre-folded into wo1[:h] -> "wkm2o") ----
        h = relu(mm(f_d, "wkm1") + b("bkm1"))                     # f32 (B, 18)
        d_part = mm(h.astype(bf16), "wkm2o")                      # f32 (B, 32)

        # ---- DeepSet feature extractor (f32 bias/ReLU math, bf16 storage) ----
        h1 = relu(mm(f_o, "wf1") + b("bf1")).astype(bf16)         # bf16 (B*S, 32)
        h2 = relu(mm(h1, "wf2") + b("bf2")).astype(bf16)          # bf16 (B*S, 32)

        # ---- mean set-pool hoisted before the (linear) last extractor layer ----
        # 1/S pattern baked into the slab; contraction split into K=128 MXU dots.
        ph2 = jnp.zeros((batch, HID_DIM), f32)
        for c in range(N_POOL_CHUNKS):
            k0 = c * LANE
            k1 = min(k0 + LANE, n_rows)
            ph2 = ph2 + jnp.dot(w(f"pool{c}"), h2[k0:k1, :],
                                preferred_element_type=f32)       # f32 (B, 32)

        # ---- fused extractor-last-layer + regressor-first-layer (wfr = wf3 @ wr1) ----
        r = relu(mm(ph2.astype(bf16), "wfr") + b("bfr"))          # f32 (B, 32)
        # regressor last layer folded into wo1[h:] -> "wr2o"
        o_part = mm(r.astype(bf16), "wr2o")                       # f32 (B, 32)

        # ---- MLP_out (bkm2/br2/bo1 folded into "bo1f"); lane-dense padded last layer ----
        g = relu(d_part + o_part + b("bo1f")).astype(bf16)        # bf16 (B, 32)
        out_ref[...] = (mm(g, "wo2p") + b("bo2p")).astype(out_ref.dtype)   # f32 (B, 128)

    return kernel


# ----------------------------------------------------------------------------- host prep (one-time)
def prepare_params(p):
    """One-time host-side prep: algebraic folds + packing into the bf16 weight slab and
    the f32 bias slab.  Never on the per-call forward path."""
    q = {k: np.asarray(v, np.float64) for k, v in p.items()}

    # [out_d, out_o] @ wo1 == out_d @ wo1[:h] + out_o @ wo1[h:]  (exact, no ReLU in between)
    wo1_d, wo1_o = q["wo1"][:HID_DIM], q["wo1"][HID_DIM:]
    wkm2o = q["wkm2"] @ wo1_d
    wr2o = q["wr2"] @ wo1_o
    bo1f = q["bo1"] + q["bkm2"] @ wo1_d + q["br2"] @ wo1_o
    # mean-pool is linear -> hoist before wf3; then fold wf3 into wr1 (no ReLU in between)
    wfr = q["wf3"] @ q["wr1"]
    bfr = q["bf3"] @ q["wr1"] + q["br1"]

    wo2p = np.zeros((HID_DIM, LANE)); wo2p[:, :OUT_DIM] = q["wo2"]
    bo2p = np.zeros((1, LANE)); bo2p[:, :OUT_DIM] = q["bo2"]

    pool = np.zeros((BATCH, BATCH * SET_SIZE))
    for i in range(BATCH):
        pool[i, i * SET_SIZE:(i + 1) * SET_SIZE] = 1.0 / SET_SIZE   # 1/16 exact in bf16

    w_blocks = {"wkm1": q["wkm1"], "wkm2o": wkm2o, "wf1": q["wf1"], "wf2": q["wf2"],
                "wfr": wfr, "wr2o": wr2o, "wo2p": wo2p}
    for c in range(N_POOL_CHUNKS):
        w_blocks[f"pool{c}"] = pool[:, c * LANE:min((c + 1) * LANE, BATCH * SET_SIZE)]

    w_slab = np.zeros((W_ROWS, LANE), np.float32)
    for name, arr in w_blocks.items():
        r0, rows, cols = W_OFF[name]
        assert arr.shape == (rows, cols)
        w_slab[r0:r0 + rows, :cols] = arr

    b_blocks = {"bkm1": q["bkm1"], "bf1": q["bf1"], "bf2": q["bf2"],
                "bfr": bfr, "bo1f": bo1f, "bo2p": bo2p}
    b_slab = np.zeros((B_ROWS, LANE), np.float32)
    for name, arr in b_blocks.items():
        r0, cols = B_OFF[name]
        assert arr.shape == (1, cols)
        b_slab[r0, :cols] = arr[0]

    return jnp.asarray(w_slab).astype(jnp.bfloat16), jnp.asarray(b_slab, jnp.float32)


# ----------------------------------------------------------------------------- jitted forward
@jax.jit
def scalar_model_forward(f_d, f_o, w_slab, b_slab):
    B, S, C = f_o.shape
    assert B == BATCH and S == SET_SIZE and C == INPUT_OFF and f_d.shape == (B, INPUT_DIM)

    # Pack both activations into one bf16 slab (f_d at rows [0,B), f_o_flat at [B, B+B*S)).
    acts = jnp.zeros((B + B * S, ACT_COLS), jnp.bfloat16)
    acts = acts.at[:B, :INPUT_DIM].set(f_d.astype(jnp.bfloat16))
    acts = acts.at[B:, :INPUT_OFF].set(f_o.reshape(B * S, C).astype(jnp.bfloat16))

    out_padded = pl.pallas_call(
        _make_kernel(B, S),
        out_shape=jax.ShapeDtypeStruct((B, LANE), jnp.float32),
        in_specs=[
            pl.BlockSpec(memory_space=pltpu.MemorySpace.VMEM),   # activation slab  (272, 16) bf16
            pl.BlockSpec(memory_space=pltpu.MemorySpace.VMEM),   # weight slab      (224, 128) bf16
            pl.BlockSpec(memory_space=pltpu.MemorySpace.VMEM),   # bias slab        (8, 128)   f32
        ],
        out_specs=pl.BlockSpec(memory_space=pltpu.MemorySpace.VMEM),
    )(acts, w_slab, b_slab)

    return out_padded[:, :OUT_DIM]


# ----------------------------------------------------------------------------- reference / setup
def init_params(key):
    def lin(k, fan_in, fan_out):
        kw, kb = jax.random.split(k)
        w = jax.random.normal(kw, (fan_in, fan_out), jnp.float32) / np.sqrt(fan_in)
        b = jax.random.normal(kb, (1, fan_out), jnp.float32) * 0.01
        return w, b

    keys = jax.random.split(key, 9)
    p = {}
    p["wkm1"], p["bkm1"] = lin(keys[0], INPUT_DIM, INPUT_DIM * 2)
    p["wkm2"], p["bkm2"] = lin(keys[1], INPUT_DIM * 2, HID_DIM)
    p["wf1"], p["bf1"] = lin(keys[2], INPUT_OFF, HID_DIM)
    p["wf2"], p["bf2"] = lin(keys[3], HID_DIM, HID_DIM)
    p["wf3"], p["bf3"] = lin(keys[4], HID_DIM, 2 * HID_DIM)
    p["wr1"], p["br1"] = lin(keys[5], 2 * HID_DIM, HID_DIM)
    p["wr2"], p["br2"] = lin(keys[6], HID_DIM, HID_DIM)
    p["wo1"], p["bo1"] = lin(keys[7], 2 * HID_DIM, HID_DIM)
    p["wo2"], p["bo2"] = lin(keys[8], HID_DIM, OUT_DIM)
    return p


def reference_forward(f_d, f_o, p):
    relu = jax.nn.relu
    h = relu(f_d @ p["wkm1"] + p["bkm1"])
    out_d = h @ p["wkm2"] + p["bkm2"]

    h1 = relu(jnp.einsum("bsc,cd->bsd", f_o, p["wf1"]) + p["bf1"])
    h2 = relu(jnp.einsum("bsc,cd->bsd", h1, p["wf2"]) + p["bf2"])
    h3 = jnp.einsum("bsc,cd->bsd", h2, p["wf3"]) + p["bf3"]
    pooled = jnp.mean(h3, axis=1)
    r = relu(pooled @ p["wr1"] + p["br1"])
    out_o = r @ p["wr2"] + p["br2"]

    cat = jnp.concatenate([out_d, out_o], axis=-1)
    g = relu(cat @ p["wo1"] + p["bo1"])
    return g @ p["wo2"] + p["bo2"]


if __name__ == "__main__":
    key = jax.random.PRNGKey(0)
    k_p, k_d, k_o = jax.random.split(key, 3)

    params = init_params(k_p)
    w_slab, b_slab = prepare_params(params)          # one-time host prep, off the forward path

    f_d = jax.random.normal(k_d, (BATCH, INPUT_DIM), jnp.float32)
    f_o = jax.random.normal(k_o, (BATCH, SET_SIZE, INPUT_OFF), jnp.float32)

    out = jax.block_until_ready(scalar_model_forward(f_d, f_o, w_slab, b_slab))
    ref = jax.block_until_ready(reference_forward(f_d, f_o, params))

    np.testing.assert_allclose(np.asarray(out), np.asarray(ref), rtol=2e-2, atol=2e-2)
    assert out.shape == (BATCH, OUT_DIM)
    print("KERNEL_OK")
</pallas_src>

<mosaic_0001>
module attributes {stable_mosaic.version = 11 : i64} {
  func.func @kernel(%arg0: memref<272x16xbf16, #tpu.memory_space<vmem>>, %arg1: memref<224x128xbf16, #tpu.memory_space<vmem>>, %arg2: memref<8x128xf32, #tpu.memory_space<vmem>>, %arg3: memref<16x128xf32, #tpu.memory_space<vmem>>) attributes {dimension_semantics = [], scalar_prefetch = 0 : i64, scratch_operands = 0 : i64, tpu.core_type = #tpu.core_type<tc>} {
    %c0 = arith.constant 0 : index
    %c0_0 = arith.constant 0 : index
    %0 = vector.load %arg0[%c0, %c0_0] : memref<272x16xbf16, #tpu.memory_space<vmem>>, vector<16x9xbf16>
    %c16 = arith.constant 16 : index
    %c0_1 = arith.constant 0 : index
    %1 = vector.load %arg0[%c16, %c0_1] : memref<272x16xbf16, #tpu.memory_space<vmem>>, vector<256x3xbf16>
    %c0_2 = arith.constant 0 : index
    %c0_3 = arith.constant 0 : index
    %2 = vector.load %arg1[%c0_2, %c0_3] : memref<224x128xbf16, #tpu.memory_space<vmem>>, vector<9x18xbf16>
    %cst = arith.constant dense<0.000000e+00> : vector<16x18xf32>
    %3 = tpu.matmul %0, %2, %cst {dimension_numbers = #tpu.dot_dimension_numbers<[1], [0], [0], [1], [0, 0, 1, 1], [], []>} : vector<16x9xbf16>, vector<9x18xbf16>, vector<16x18xf32> -> vector<16x18xf32>
    %c0_4 = arith.constant 0 : index
    %c0_5 = arith.constant 0 : index
    %4 = vector.load %arg2[%c0_4, %c0_5] : memref<8x128xf32, #tpu.memory_space<vmem>>, vector<1x18xf32>
    %5 = vector.broadcast %4 : vector<1x18xf32> to vector<16x18xf32>
    %6 = arith.addf %3, %5 : vector<16x18xf32>
    %cst_6 = arith.constant 0.000000e+00 : f32
    %7 = vector.broadcast %cst_6 : f32 to vector<16x18xf32>
    %8 = arith.maximumf %6, %7 : vector<16x18xf32>
    %9 = arith.truncf %8 : vector<16x18xf32> to vector<16x18xbf16>
    %c16_7 = arith.constant 16 : index
    %c0_8 = arith.constant 0 : index
    %10 = vector.load %arg1[%c16_7, %c0_8] : memref<224x128xbf16, #tpu.memory_space<vmem>>, vector<18x32xbf16>
    %cst_9 = arith.constant dense<0.000000e+00> : vector<16x32xf32>
    %11 = tpu.matmul %9, %10, %cst_9 {dimension_numbers = #tpu.dot_dimension_numbers<[1], [0], [0], [1], [0, 0, 1, 1], [], []>} : vector<16x18xbf16>, vector<18x32xbf16>, vector<16x32xf32> -> vector<16x32xf32>
    %c48 = arith.constant 48 : index
    %c0_10 = arith.constant 0 : index
    %12 = vector.load %arg1[%c48, %c0_10] : memref<224x128xbf16, #tpu.memory_space<vmem>>, vector<3x32xbf16>
    %cst_11 = arith.constant dense<0.000000e+00> : vector<256x32xf32>
    %13 = tpu.matmul %1, %12, %cst_11 {dimension_numbers = #tpu.dot_dimension_numbers<[1], [0], [0], [1], [0, 0, 1, 1], [], []>} : vector<256x3xbf16>, vector<3x32xbf16>, vector<256x32xf32> -> vector<256x32xf32>
    %c1 = arith.constant 1 : index
    %c0_12 = arith.constant 0 : index
    %14 = vector.load %arg2[%c1, %c0_12] : memref<8x128xf32, #tpu.memory_space<vmem>>, vector<1x32xf32>
    %15 = vector.broadcast %14 : vector<1x32xf32> to vector<256x32xf32>
    %16 = arith.addf %13, %15 : vector<256x32xf32>
    %cst_13 = arith.constant 0.000000e+00 : f32
    %17 = vector.broadcast %cst_13 : f32 to vector<256x32xf32>
    %18 = arith.maximumf %16, %17 : vector<256x32xf32>
    %19 = arith.truncf %18 : vector<256x32xf32> to vector<256x32xbf16>
    %c64 = arith.constant 64 : index
    %c0_14 = arith.constant 0 : index
    %20 = vector.load %arg1[%c64, %c0_14] : memref<224x128xbf16, #tpu.memory_space<vmem>>, vector<32x32xbf16>
    %cst_15 = arith.constant dense<0.000000e+00> : vector<256x32xf32>
    %21 = tpu.matmul %19, %20, %cst_15 {dimension_numbers = #tpu.dot_dimension_numbers<[1], [0], [0], [1], [0, 0, 1, 1], [], []>} : vector<256x32xbf16>, vector<32x32xbf16>, vector<256x32xf32> -> vector<256x32xf32>
    %c2 = arith.constant 2 : index
    %c0_16 = arith.constant 0 : index
    %22 = vector.load %arg2[%c2, %c0_16] : memref<8x128xf32, #tpu.memory_space<vmem>>, vector<1x32xf32>
    %23 = vector.broadcast %22 : vector<1x32xf32> to vector<256x32xf32>
    %24 = arith.addf %21, %23 : vector<256x32xf32>
    %cst_17 = arith.constant 0.000000e+00 : f32
    %25 = vector.broadcast %cst_17 : f32 to vector<256x32xf32>
    %26 = arith.maximumf %24, %25 : vector<256x32xf32>
    %27 = arith.truncf %26 : vector<256x32xf32> to vector<256x32xbf16>
    %cst_18 = arith.constant 0.000000e+00 : f32
    %28 = vector.broadcast %cst_18 : f32 to vector<16x32xf32>
    %c96 = arith.constant 96 : index
    %c0_19 = arith.constant 0 : index
    %29 = vector.load %arg1[%c96, %c0_19] : memref<224x128xbf16, #tpu.memory_space<vmem>>, vector<16x128xbf16>
    %30 = vector.extract_strided_slice %27 {offsets = [0, 0], sizes = [128, 32], strides = [1, 1]} : vector<256x32xbf16> to vector<128x32xbf16>
    %cst_20 = arith.constant dense<0.000000e+00> : vector<16x32xf32>
    %31 = tpu.matmul %29, %30, %cst_20 {dimension_numbers = #tpu.dot_dimension_numbers<[1], [0], [0], [1], [0, 0, 1, 1], [], []>} : vector<16x128xbf16>, vector<128x32xbf16>, vector<16x32xf32> -> vector<16x32xf32>
    %32 = arith.addf %28, %31 : vector<16x32xf32>
    %c112 = arith.constant 112 : index
    %c0_21 = arith.constant 0 : index
    %33 = vector.load %arg1[%c112, %c0_21] : memref<224x128xbf16, #tpu.memory_space<vmem>>, vector<16x128xbf16>
    %34 = vector.extract_strided_slice %27 {offsets = [128, 0], sizes = [128, 32], strides = [1, 1]} : vector<256x32xbf16> to vector<128x32xbf16>
    %cst_22 = arith.constant dense<0.000000e+00> : vector<16x32xf32>
    %35 = tpu.matmul %33, %34, %cst_22 {dimension_numbers = #tpu.dot_dimension_numbers<[1], [0], [0], [1], [0, 0, 1, 1], [], []>} : vector<16x128xbf16>, vector<128x32xbf16>, vector<16x32xf32> -> vector<16x32xf32>
    %36 = arith.addf %32, %35 : vector<16x32xf32>
    %37 = arith.truncf %36 : vector<16x32xf32> to vector<16x32xbf16>
    %c128 = arith.constant 128 : index
    %c0_23 = arith.constant 0 : index
    %38 = vector.load %arg1[%c128, %c0_23] : memref<224x128xbf16, #tpu.memory_space<vmem>>, vector<32x32xbf16>
    %cst_24 = arith.constant dense<0.000000e+00> : vector<16x32xf32>
    %39 = tpu.matmul %37, %38, %cst_24 {dimension_numbers = #tpu.dot_dimension_numbers<[1], [0], [0], [1], [0, 0, 1, 1], [], []>} : vector<16x32xbf16>, vector<32x32xbf16>, vector<16x32xf32> -> vector<16x32xf32>
    %c3 = arith.constant 3 : index
    %c0_25 = arith.constant 0 : index
    %40 = vector.load %arg2[%c3, %c0_25] : memref<8x128xf32, #tpu.memory_space<vmem>>, vector<1x32xf32>
    %41 = vector.broadcast %40 : vector<1x32xf32> to vector<16x32xf32>
    %42 = arith.addf %39, %41 : vector<16x32xf32>
    %cst_26 = arith.constant 0.000000e+00 : f32
    %43 = vector.broadcast %cst_26 : f32 to vector<16x32xf32>
    %44 = arith.maximumf %42, %43 : vector<16x32xf32>
    %45 = arith.truncf %44 : vector<16x32xf32> to vector<16x32xbf16>
    %c160 = arith.constant 160 : index
    %c0_27 = arith.constant 0 : index
    %46 = vector.load %arg1[%c160, %c0_27] : memref<224x128xbf16, #tpu.memory_space<vmem>>, vector<32x32xbf16>
    %cst_28 = arith.constant dense<0.000000e+00> : vector<16x32xf32>
    %47 = tpu.matmul %45, %46, %cst_28 {dimension_numbers = #tpu.dot_dimension_numbers<[1], [0], [0], [1], [0, 0, 1, 1], [], []>} : vector<16x32xbf16>, vector<32x32xbf16>, vector<16x32xf32> -> vector<16x32xf32>
    %48 = arith.addf %11, %47 : vector<16x32xf32>
    %c4 = arith.constant 4 : index
    %c0_29 = arith.constant 0 : index
    %49 = vector.load %arg2[%c4, %c0_29] : memref<8x128xf32, #tpu.memory_space<vmem>>, vector<1x32xf32>
    %50 = vector.broadcast %49 : vector<1x32xf32> to vector<16x32xf32>
    %51 = arith.addf %48, %50 : vector<16x32xf32>
    %cst_30 = arith.constant 0.000000e+00 : f32
    %52 = vector.broadcast %cst_30 : f32 to vector<16x32xf32>
    %53 = arith.maximumf %51, %52 : vector<16x32xf32>
    %54 = arith.truncf %53 : vector<16x32xf32> to vector<16x32xbf16>
    %c192 = arith.constant 192 : index
    %c0_31 = arith.constant 0 : index
    %55 = vector.load %arg1[%c192, %c0_31] : memref<224x128xbf16, #tpu.memory_space<vmem>>, vector<32x128xbf16>
    %cst_32 = arith.constant dense<0.000000e+00> : vector<16x128xf32>
    %56 = tpu.matmul %54, %55, %cst_32 {dimension_numbers = #tpu.dot_dimension_numbers<[1], [0], [0], [1], [0, 0, 1, 1], [], []>} : vector<16x32xbf16>, vector<32x128xbf16>, vector<16x128xf32> -> vector<16x128xf32>
    %c5 = arith.constant 5 : index
    %c0_33 = arith.constant 0 : index
    %57 = vector.load %arg2[%c5, %c0_33] : memref<8x128xf32, #tpu.memory_space<vmem>>, vector<1x128xf32>
    %58 = vector.broadcast %57 : vector<1x128xf32> to vector<16x128xf32>
    %59 = arith.addf %56, %58 : vector<16x128xf32>
    %c0_34 = arith.constant 0 : index
    %c0_35 = arith.constant 0 : index
    %60 = vector.load %arg3[%c0_34, %c0_35] : memref<16x128xf32, #tpu.memory_space<vmem>>, vector<16x128xf32>
    tpu.vector_store %arg3[%c0_34, %c0_35], %59 {strides = array<i32>} : memref<16x128xf32, #tpu.memory_space<vmem>>, vector<16x128xf32>,
    return
  }
}

</mosaic_0001>

<bundles_post_ra>
// kernel: scalar_model_forward.1
= control target key start
LH: loop header
LB: loop body
LE: loop exit
PB: predicated region body
PF: predicated region fallthrough
CT: control target
= control target key end

     0   :  { %vm226_vm0 = vcmask 1040384   ;;  %vm227_vm1 = vcmask 1041408   ;;  %vm67_vm2 = vcmask 1043456   ;;  %v1072_v1 = vmov 65535   ;;  %s1357_s1 = inlined_call_operand.vmem [shape: bf16[224,128], index: 1, kind: input, shape index: {}]   ;;  %s1358_s0 = inlined_call_operand.vmem [shape: bf16[272,16], index: 0, kind: input, shape index: {}]   ;;  %s1359_s2 = inlined_call_operand.vmem [shape: f32[8,128], index: 2, kind: input, shape index: {}]   ;;  %s1360_s3 = inlined_call_operand.vmem [shape: f32[16,128], index: 3, kind: output, shape index: {}]  }
   0x1   :  { %v94_v0 = vld [vmem:[%s1357_s1 + $0x18] sm:$0x3]  ;;  %v228_v2 = vsel %vm226_vm0, 4294967295, %v1072_v1  ;;  %v886_v3 = vld [vmem:[%s1357_s1] sm:$0xf]  ;;  %vm68_vm3 = vcmask 1044480  }
   0x2   :  { %v229_v4 = vsel %vm227_vm1, %v228_v2, 0  ;;  %v1050_v5 = vld [vmem:[%s1357_s1] sm:$0x10]  ;;  %v69_v6 = vsel %vm67_vm2, 4294967295, %v1072_v1  ;;  %v1040_v10 = vld [vmem:[%s1358_s0 + $0x38] sm:$0xff]  ;;  %vm177_vm4 = vcmask 23552  }
   0x3   :  { %v231_v7 = vand.u32 %v229_v4, %v94_v0  ;;  %v887_v8 = vor.u32 %v1050_v5, %v886_v3  ;;  %v70_v9 = vsel %vm68_vm3, %v69_v6, 0  ;;  %v1033_v12 = vld [vmem:[%s1358_s0] sm:$0xff]  ;;  %vm63_vm5 = vcmask 72704   ;;  %v1034_v14 = vld [vmem:[%s1358_s0 + $0x8] sm:$0xff]  ;;  %v1035_v16 = vld [vmem:[%s1358_s0 + $0x10] sm:$0xff] }
   0x4   :  { %v1041_v13 = vld [vmem:[%s1358_s0 + $0x40] sm:$0xff]  ;;  %v1042_v15 = vld [vmem:[%s1358_s0 + $0x48] sm:$0xff]  ;;  %v1043_v17 = vld [vmem:[%s1358_s0 + $0x50] sm:$0xff]  ;;  %vm388_vm6 = vcmask 261120   ;;  %vm811_vm7 = vcmask 146432  }
   0x5   :  { %1062 = vmatpush.bf16.msra.mxu1 %v231_v7  ;;  %v72_v11 = vand.u32 %v887_v8, %v70_v9  ;;  %v1036_v18 = vld [vmem:[%s1358_s0 + $0x18] sm:$0xff]  ;;  %v1037_v20 = vld [vmem:[%s1358_s0 + $0x20] sm:$0xff]  ;;  %v1038_v22 = vld [vmem:[%s1358_s0 + $0x28] sm:$0xff] }
   0x6   :  { %v1044_v19 = vld [vmem:[%s1358_s0 + $0x58] sm:$0xff]  ;;  %v1045_v21 = vld [vmem:[%s1358_s0 + $0x60] sm:$0xff]  ;;  %v1046_v23 = vld [vmem:[%s1358_s0 + $0x68] sm:$0xff] }
   0x7   :  { %81 = vmatpush.bf16.msra.mxu0 %v72_v11  ;;  %v1039_v24 = vld [vmem:[%s1358_s0 + $0x30] sm:$0xff]  ;;  %v1053_v26 = vld [vmem:[%s1357_s1 + $0x28] sm:$0xff]  ;;  %v1052_v27 = vld [vmem:[%s1357_s1 + $0x20] sm:$0xff] }
   0x8   :  { %959 = vmatmul.msk.bf16.vlgmr.msra.gmra.mxu1 %vm177_vm4, %v1040_v10  ;;  %v1047_v25 = vld [vmem:[%s1358_s0 + $0x70] sm:$0xff]  ;;  %443 = vmatpush.bf16.msra.mxu2 %v1053_v26  ;;  %v1048_v28 = vld [vmem:[%s1358_s0 + $0x78] sm:$0xff]  ;;  %v1174_v31 = vld [vmem:[%s1359_s2 + $0x1] ss:$0 sm:$0xff] }
   0x9   :  { %1063 = vmatpush.bf16.msra.mxu3 %v1053_v26  ;;  %v1067_v32 = vld [vmem:[%s1359_s2] ss:$0 sm:$0xff] }
   0xa   :  { %888 = vmatmul.msk.bf16.vlgmr.msra.gmra.mxu0 %vm63_vm5, %v1033_v12  ;;  %v1049_v45 = vld [vmem:[%s1358_s0 + $0x80] sm:$0xff] }
   0xb   :  { %240 = vmatpush.bf16.msrb.mxu0 %v231_v7 }
   0xc   :  { %444 = vmatpush.bf16.msra.mxu2 %v1052_v27 }
   0xd   :  { %1064 = vmatpush.bf16.msra.mxu3 %v1052_v27 }
  0x18   :  { %960 = vmatmul.msk.bf16.gmra.mxu1 %vm177_vm4, %v1041_v13 }
  0x1a   :  { %953 = vmatmul.msk.bf16.vlgmr.msrb.gmra.mxu0 %vm177_vm4, %v1034_v14 }
  0x28   :  { %961 = vmatmul.msk.bf16.gmra.mxu1 %vm177_vm4, %v1042_v15 }
  0x2a   :  { %954 = vmatmul.msk.bf16.gmra.mxu0 %vm177_vm4, %v1035_v16 }
  0x38   :  { %962 = vmatmul.msk.bf16.gmra.mxu1 %vm177_vm4, %v1043_v17 }
  0x3a   :  { %955 = vmatmul.msk.bf16.gmra.mxu0 %vm177_vm4, %v1036_v18 }
  0x48   :  { %963 = vmatmul.msk.bf16.gmra.mxu1 %vm177_vm4, %v1044_v19 }
  0x4a   :  { %956 = vmatmul.msk.bf16.gmra.mxu0 %vm177_vm4, %v1037_v20 }
  0x58   :  { %964 = vmatmul.msk.bf16.gmra.mxu1 %vm177_vm4, %v1045_v21 }
  0x5a   :  { %957 = vmatmul.msk.bf16.gmra.mxu0 %vm177_vm4, %v1038_v22 }
  0x68   :  { %965 = vmatmul.msk.bf16.gmra.mxu1 %vm177_vm4, %v1046_v23 }
  0x6a   :  { %958 = vmatmul.msk.bf16.gmra.mxu0 %vm177_vm4, %v1039_v24 }
  0x78   :  { %966 = vmatmul.msk.bf16.gmra.mxu1 %vm177_vm4, %v1047_v25 }
  0x85   :  { %v272_v29 = vpop.f32.mrf.mxu1 }
  0x86   :  { %v273_v33 = vadd.f32 %v1174_v31, %v272_v29 }
  0x87   :  { %v83_v30 = vpop.f32.mrf.mxu0 }
  0x88   :  { %967 = vmatmul.msk.bf16.gmra.mxu1 %vm177_vm4, %v1048_v28  ;;  %v84_v34 = vadd.f32 %v1067_v32, %v83_v30  ;;  %v334_v38 = vmax.f32 %v273_v33, 0.0 }
  0x8a   :  { %v88_v39 = vmax.f32 %v84_v34, 0.0 }
  0x8d   :  { %v274_v35 = vpop.f32.mrf.mxu1 }
  0x8e   :  { %v275_v36 = vadd.f32 %v1174_v31, %v274_v35 }
  0x8f   :  { %v85_v37 = vpop.f32.mrf.mxu0 }
  0x90   :  { %v335_v40 = vmax.f32 %v275_v36, 0.0  ;;  %v86_v41 = vadd.f32 %v1067_v32, %v85_v37 }
  0x92   :  { %v1182_v42 = vpack.c.bf16 %v335_v40, %v334_v38  ;;  %v89_v43 = vmax.f32 %v86_v41, 0.0 }
  0x94   :  { %v1184_v44 = vpack.c.bf16 %v89_v43, %v88_v39 }
  0x95   :  { %v277_v46 = vpop.f32.mrf.mxu1 }
  0x96   :  { %v278_v48 = vadd.f32 %v1174_v31, %v277_v46 }
  0x97   :  { %v242_v47 = vpop.f32.mrf.mxu0 }
  0x98   :  { %968 = vmatmul.msk.bf16.gmra.mxu1 %vm177_vm4, %v1049_v45  ;;  %v243_v49 = vadd.f32 %v1174_v31, %v242_v47  ;;  %v336_v53 = vmax.f32 %v278_v48, 0.0 }
  0x9a   :  { %v322_v54 = vmax.f32 %v243_v49, 0.0 }
  0x9d   :  { %v279_v50 = vpop.f32.mrf.mxu1 }
  0x9e   :  { %v280_v51 = vadd.f32 %v1174_v31, %v279_v50 }
  0x9f   :  { %v244_v52 = vpop.f32.mrf.mxu0 }
  0xa0   :  { %v337_v55 = vmax.f32 %v280_v51, 0.0  ;;  %v245_v56 = vadd.f32 %v1174_v31, %v244_v52 }
  0xa2   :  { %v1194_v57 = vpack.c.bf16 %v337_v55, %v336_v53  ;;  %v323_v58 = vmax.f32 %v245_v56, 0.0 }
  0xa4   :  { %v354_v59 = vpack.c.bf16 %v323_v58, %v322_v54 }
  0xa5   :  { %v282_v60 = vpop.f32.mrf.mxu1 }
  0xa6   :  { %977 = vmatmul.msk.bf16.vlgmr.msra.gmra.mxu2 %vm388_vm6, %v354_v59  ;;  %v283_v62 = vadd.f32 %v1174_v31, %v282_v60 }
  0xa7   :  { %v247_v61 = vpop.f32.mrf.mxu0 }
  0xa8   :  { %v248_v63 = vadd.f32 %v1174_v31, %v247_v61  ;;  %v338_v3 = vmax.f32 %v283_v62, 0.0 }
  0xaa   :  { %v324_v4 = vmax.f32 %v248_v63, 0.0 }
  0xad   :  { %v284_v0 = vpop.f32.mrf.mxu1 }
  0xae   :  { %v285_v1 = vadd.f32 %v1174_v31, %v284_v0 }
  0xaf   :  { %v249_v2 = vpop.f32.mrf.mxu0 }
  0xb0   :  { %v339_v5 = vmax.f32 %v285_v1, 0.0  ;;  %v250_v6 = vadd.f32 %v1174_v31, %v249_v2 }
  0xb2   :  { %v1201_v7 = vpack.c.bf16 %v339_v5, %v338_v3  ;;  %v325_v8 = vmax.f32 %v250_v6, 0.0 }
  0xb4   :  { %v355_v9 = vpack.c.bf16 %v325_v8, %v324_v4 }
  0xb5   :  { %v287_v10 = vpop.f32.mrf.mxu1 }
  0xb6   :  { %978 = vmatmul.msk.bf16.gmra.mxu2 %vm388_vm6, %v355_v9  ;;  %v288_v12 = vadd.f32 %v1174_v31, %v287_v10 }
  0xb7   :  { %v252_v11 = vpop.f32.mrf.mxu0 }
  0xb8   :  { %v253_v13 = vadd.f32 %v1174_v31, %v252_v11  ;;  %v340_v17 = vmax.f32 %v288_v12, 0.0 }
  0xba   :  { %v326_v18 = vmax.f32 %v253_v13, 0.0 }
  0xbd   :  { %v289_v14 = vpop.f32.mrf.mxu1 }
  0xbe   :  { %v290_v15 = vadd.f32 %v1174_v31, %v289_v14 }
  0xbf   :  { %v254_v16 = vpop.f32.mrf.mxu0 }
  0xc0   :  { %v341_v19 = vmax.f32 %v290_v15, 0.0  ;;  %v255_v20 = vadd.f32 %v1174_v31, %v254_v16 }
  0xc2   :  { %v1208_v21 = vpack.c.bf16 %v341_v19, %v340_v17  ;;  %v327_v22 = vmax.f32 %v255_v20, 0.0 }
  0xc4   :  { %v356_v23 = vpack.c.bf16 %v327_v22, %v326_v18 }
  0xc5   :  { %v292_v24 = vpop.f32.mrf.mxu1 }
  0xc6   :  { %979 = vmatmul.msk.bf16.gmra.mxu2 %vm388_vm6, %v356_v23  ;;  %v293_v26 = vadd.f32 %v1174_v31, %v292_v24 }
  0xc7   :  { %v257_v25 = vpop.f32.mrf.mxu0 }
  0xc8   :  { %v258_v27 = vadd.f32 %v1174_v31, %v257_v25  ;;  %v342_v32 = vmax.f32 %v293_v26, 0.0 }
  0xca   :  { %v328_v33 = vmax.f32 %v258_v27, 0.0 }
  0xcd   :  { %v294_v28 = vpop.f32.mrf.mxu1 }
  0xce   :  { %v295_v29 = vadd.f32 %v1174_v31, %v294_v28  ;;  %v1247_v28 = vld [vmem:[%s1359_s2 + $0x2] ss:$0 sm:$0xff] }
  0xcf   :  { %v259_v30 = vpop.f32.mrf.mxu0 }
  0xd0   :  { %v343_v34 = vmax.f32 %v295_v29, 0.0  ;;  %v260_v35 = vadd.f32 %v1174_v31, %v259_v30 }
  0xd2   :  { %v364_v36 = vpack.c.bf16 %v343_v34, %v342_v32  ;;  %v329_v37 = vmax.f32 %v260_v35, 0.0 }
  0xd4   :  { %v357_v38 = vpack.c.bf16 %v329_v37, %v328_v33  ;;  %987 = vmatmul.msk.bf16.vlgmr.msra.gmra.mxu3 %vm388_vm6, %v364_v36 }
  0xd5   :  { %v297_v39 = vpop.f32.mrf.mxu1 }
  0xd6   :  { %980 = vmatmul.msk.bf16.gmra.mxu2 %vm388_vm6, %v357_v38  ;;  %v298_v41 = vadd.f32 %v1174_v31, %v297_v39 }
  0xd7   :  { %v262_v40 = vpop.f32.mrf.mxu0 }
  0xd8   :  { %v263_v43 = vadd.f32 %v1174_v31, %v262_v40  ;;  %v344_v48 = vmax.f32 %v298_v41, 0.0 }
  0xda   :  { %v330_v49 = vmax.f32 %v263_v43, 0.0 }
  0xdd   :  { %v299_v45 = vpop.f32.mrf.mxu1 }
  0xde   :  { %v300_v46 = vadd.f32 %v1174_v31, %v299_v45 }
  0xdf   :  { %v264_v47 = vpop.f32.mrf.mxu0 }
  0xe0   :  { %v345_v50 = vmax.f32 %v300_v46, 0.0  ;;  %v265_v51 = vadd.f32 %v1174_v31, %v264_v47 }
  0xe2   :  { %v365_v52 = vpack.c.bf16 %v345_v50, %v344_v48  ;;  %v331_v53 = vmax.f32 %v265_v51, 0.0 }
  0xe4   :  { %v358_v54 = vpack.c.bf16 %v331_v53, %v330_v49  ;;  %988 = vmatmul.msk.bf16.gmra.mxu3 %vm388_vm6, %v365_v52 }
  0xe5   :  { %v302_v55 = vpop.f32.mrf.mxu1 }
  0xe6   :  { %981 = vmatmul.msk.bf16.gmra.mxu2 %vm388_vm6, %v358_v54  ;;  %v303_v58 = vadd.f32 %v1174_v31, %v302_v55 }
  0xe7   :  { %v267_v56 = vpop.f32.mrf.mxu0 }
  0xe8   :  { %v268_v59 = vadd.f32 %v1174_v31, %v267_v56  ;;  %v346_v63 = vmax.f32 %v303_v58, 0.0 }
  0xea   :  { %v332_v0 = vmax.f32 %v268_v59, 0.0 }
  0xed   :  { %v304_v60 = vpop.f32.mrf.mxu1 }
  0xee   :  { %v305_v61 = vadd.f32 %v1174_v31, %v304_v60 }
  0xef   :  { %v269_v62 = vpop.f32.mrf.mxu0 }
  0xf0   :  { %v347_v1 = vmax.f32 %v305_v61, 0.0  ;;  %v270_v2 = vadd.f32 %v1174_v31, %v269_v62 }
  0xf2   :  { %v366_v3 = vpack.c.bf16 %v347_v1, %v346_v63  ;;  %v333_v4 = vmax.f32 %v270_v2, 0.0 }
  0xf4   :  { %v359_v5 = vpack.c.bf16 %v333_v4, %v332_v0  ;;  %989 = vmatmul.msk.bf16.gmra.mxu3 %vm388_vm6, %v366_v3 }
  0xf5   :  { %v307_v6 = vpop.f32.mrf.mxu1 }
  0xf6   :  { %982 = vmatmul.msk.bf16.gmra.mxu2 %vm388_vm6, %v359_v5  ;;  %v308_v8 = vadd.f32 %v1174_v31, %v307_v6 }
  0xf8   :  { %v348_v11 = vmax.f32 %v308_v8, 0.0 }
  0xfd   :  { %v309_v9 = vpop.f32.mrf.mxu1 }
  0xfe   :  { %v310_v10 = vadd.f32 %v1174_v31, %v309_v9 }
 0x100   :  { %v349_v12 = vmax.f32 %v310_v10, 0.0 }
 0x102   :  { %v367_v13 = vpack.c.bf16 %v349_v12, %v348_v11 }
 0x104   :  { %990 = vmatmul.msk.bf16.gmra.mxu3 %vm388_vm6, %v367_v13 }
 0x105   :  { %v312_v14 = vpop.f32.mrf.mxu1 }
 0x106   :  { %983 = vmatmul.msk.bf16.gmra.mxu2 %vm388_vm6, %v1182_v42  ;;  %v313_v15 = vadd.f32 %v1174_v31, %v312_v14 }
 0x108   :  { %v350_v18 = vmax.f32 %v313_v15, 0.0 }
 0x10d   :  { %v314_v16 = vpop.f32.mrf.mxu1 }
 0x10e   :  { %v315_v17 = vadd.f32 %v1174_v31, %v314_v16 }
 0x110   :  { %v351_v19 = vmax.f32 %v315_v17, 0.0 }
 0x112   :  { %v368_v20 = vpack.c.bf16 %v351_v19, %v350_v18 }
 0x114   :  { %991 = vmatmul.msk.bf16.gmra.mxu3 %vm388_vm6, %v368_v20 }
 0x115   :  { %v317_v22 = vpop.f32.mrf.mxu1 }
 0x116   :  { %984 = vmatmul.msk.bf16.gmra.mxu2 %vm388_vm6, %v1194_v57  ;;  %v318_v23 = vadd.f32 %v1174_v31, %v317_v22 }
 0x118   :  { %v352_v42 = vmax.f32 %v318_v23, 0.0 }
 0x11d   :  { %v319_v24 = vpop.f32.mrf.mxu1 }
 0x11e   :  { %v320_v25 = vadd.f32 %v1174_v31, %v319_v24 }
 0x120   :  { %v353_v26 = vmax.f32 %v320_v25, 0.0 }
 0x122   :  { %v369_v27 = vpack.c.bf16 %v353_v26, %v352_v42 }
 0x124   :  { %992 = vmatmul.msk.bf16.gmra.mxu3 %vm388_vm6, %v369_v27 }
 0x126   :  { %985 = vmatmul.msk.bf16.gmra.mxu2 %vm388_vm6, %v1201_v7 }
 0x129   :  { %v446_v29 = vpop.f32.mrf.mxu2 }
 0x12a   :  { %v447_v57 = vadd.f32 %v1247_v28, %v446_v29 }
 0x12c   :  { %v526_v30 = vmax.f32 %v447_v57, 0.0 }
 0x12e   :  { %v558_v33 = vpack.c.bf16 %v526_v30, %v526_v30 }
 0x130   :  { %v684_v36 = vunpack.c.l.b16 %v558_v33 }
 0x131   :  { %v448_v32 = vpop.f32.mrf.mxu2 }
 0x132   :  { %v449_v31 = vadd.f32 %v1247_v28, %v448_v32 }
 0x134   :  { %v527_v34 = vmax.f32 %v449_v31, 0.0 }
 0x136   :  { %v559_v35 = vpack.c.bf16 %v527_v34, %v527_v34  ;;  %986 = vmatmul.msk.bf16.gmra.mxu2 %vm388_vm6, %v1208_v21 }
 0x138   :  { %v685_v7 = vunpack.c.l.b16 %v559_v35 }
 0x139   :  { %v451_v37 = vpop.f32.mrf.mxu2 }
 0x13a   :  { %v1253_v38 = vpack.c.b16 %v685_v7, %v684_v36  ;;  %v452_v39 = vadd.f32 %v1247_v28, %v451_v37 }
 0x13c   :  { %v528_v40 = vmax.f32 %v452_v39, 0.0 }
 0x13e   :  { %v560_v45 = vpack.c.bf16 %v528_v40, %v528_v40 }
 0x140   :  { %v686_v48 = vunpack.c.l.b16 %v560_v45 }
 0x141   :  { %v453_v41 = vpop.f32.mrf.mxu2 }
 0x142   :  { %v454_v43 = vadd.f32 %v1247_v28, %v453_v41 }
 0x144   :  { %v529_v46 = vmax.f32 %v454_v43, 0.0 }
 0x146   :  { %v561_v47 = vpack.c.bf16 %v529_v46, %v529_v46 }
 0x148   :  { %v687_v49 = vunpack.c.l.b16 %v561_v47 }
 0x149   :  { %v456_v50 = vpop.f32.mrf.mxu2 }
 0x14a   :  { %v1257_v51 = vpack.c.b16 %v687_v49, %v686_v48  ;;  %v457_v21 = vadd.f32 %v1247_v28, %v456_v50 }
 0x14c   :  { %v530_v52 = vmax.f32 %v457_v21, 0.0 }
 0x14e   :  { %v562_v55 = vpack.c.bf16 %v530_v52, %v530_v52 }
 0x150   :  { %v688_v60 = vunpack.c.l.b16 %v562_v55 }
 0x151   :  { %v458_v53 = vpop.f32.mrf.mxu2 }
 0x152   :  { %v459_v54 = vadd.f32 %v1247_v28, %v458_v53 }
 0x154   :  { %v531_v56 = vmax.f32 %v459_v54, 0.0 }
 0x156   :  { %v563_v58 = vpack.c.bf16 %v531_v56, %v531_v56 }
 0x157   :  { %v496_v59 = vpop.f32.mrf.mxu3 }
 0x158   :  { %v689_v61 = vunpack.c.l.b16 %v563_v58  ;;  %v497_v63 = vadd.f32 %v1247_v28, %v496_v59 }
 0x159   :  { %v461_v62 = vpop.f32.mrf.mxu2 }
 0x15a   :  { %v1262_v0 = vpack.c.b16 %v689_v61, %v688_v60  ;;  %v462_v1 = vadd.f32 %v1247_v28, %v461_v62  ;;  %v546_v2 = vmax.f32 %v497_v63, 0.0 }
 0x15c   :  { %v532_v4 = vmax.f32 %v462_v1, 0.0  ;;  %v578_v8 = vpack.c.bf16 %v546_v2, %v546_v2 }
 0x15e   :  { %v564_v11 = vpack.c.bf16 %v532_v4, %v532_v4  ;;  %v620_v14 = vunpack.c.l.b16 %v578_v8 }
 0x15f   :  { %v498_v3 = vpop.f32.mrf.mxu3 }
 0x160   :  { %v499_v5 = vadd.f32 %v1247_v28, %v498_v3  ;;  %v690_v18 = vunpack.c.l.b16 %v564_v11 }
 0x161   :  { %v463_v6 = vpop.f32.mrf.mxu2 }
 0x162   :  { %v547_v9 = vmax.f32 %v499_v5, 0.0  ;;  %v464_v10 = vadd.f32 %v1247_v28, %v463_v6 }
 0x164   :  { %v579_v12 = vpack.c.bf16 %v547_v9, %v547_v9  ;;  %v533_v13 = vmax.f32 %v464_v10, 0.0 }
 0x166   :  { %v621_v15 = vunpack.c.l.b16 %v579_v12  ;;  %v565_v16 = vpack.c.bf16 %v533_v13, %v533_v13 }
 0x167   :  { %v501_v17 = vpop.f32.mrf.mxu3 }
 0x168   :  { %v691_v19 = vunpack.c.l.b16 %v565_v16  ;;  %v1267_v20 = vpack.c.b16 %v621_v15, %v620_v14  ;;  %v502_v23 = vadd.f32 %v1247_v28, %v501_v17 }
 0x169   :  { %v466_v22 = vpop.f32.mrf.mxu2 }
 0x16a   :  { %v1270_v24 = vpack.c.b16 %v691_v19, %v690_v18  ;;  %v548_v25 = vmax.f32 %v502_v23, 0.0  ;;  %v467_v1 = vadd.f32 %v1247_v28, %v466_v22 }
 0x16c   :  { %v580_v29 = vpack.c.bf16 %v548_v25, %v548_v25  ;;  %v534_v14 = vmax.f32 %v467_v1, 0.0 }
 0x16e   :  { %v622_v32 = vunpack.c.l.b16 %v580_v29 }
 0x16f   :  { %v503_v42 = vpop.f32.mrf.mxu3 }
 0x170   :  { %v504_v26 = vadd.f32 %v1247_v28, %v503_v42  ;;  %v566_v42 = vpack.c.bf16 %v534_v14, %v534_v14 }
 0x171   :  { %v468_v27 = vpop.f32.mrf.mxu2 }
 0x172   :  { %v549_v57 = vmax.f32 %v504_v26, 0.0  ;;  %v469_v60 = vadd.f32 %v1247_v28, %v468_v27 }
 0x174   :  { %v581_v30 = vpack.c.bf16 %v549_v57, %v549_v57  ;;  %v535_v8 = vmax.f32 %v469_v60, 0.0 }
 0x176   :  { %v623_v31 = vunpack.c.l.b16 %v581_v30  ;;  %v567_v18 = vpack.c.bf16 %v535_v8, %v535_v8 }
 0x177   :  { %v1273_v33 = vpop.f32.mrf.mxu3 }
 0x178   :  { %v1275_v34 = vpack.c.b16 %v623_v31, %v622_v32  ;;  %v693_v32 = vunpack.c.l.b16 %v567_v18 }
 0x179   :  { %v471_v35 = vpop.f32.mrf.mxu2 }
 0x17a   :  { %v472_v55 = vadd.f32 %v1247_v28, %v471_v35 }
 0x17c   :  { %v536_v3 = vmax.f32 %v472_v55, 0.0 }
 0x17e   :  { %v568_v15 = vpack.c.bf16 %v536_v3, %v536_v3 }
 0x17f   :  { %v508_v36 = vpop.f32.mrf.mxu3 }
 0x180   :  { %v694_v27 = vunpack.c.l.b16 %v568_v15 }
 0x181   :  { %v473_v7 = vpop.f32.mrf.mxu2 }
 0x182   :  { %v474_v52 = vadd.f32 %v1247_v28, %v473_v7 }
 0x184   :  { %v537_v61 = vmax.f32 %v474_v52, 0.0 }
 0x186   :  { %v569_v10 = vpack.c.bf16 %v537_v61, %v537_v61 }
 0x187   :  { %v511_v37 = vpop.f32.mrf.mxu3 }
 0x188   :  { %v695_v19 = vunpack.c.l.b16 %v569_v10  ;;  %v512_v31 = vadd.f32 %v1247_v28, %v511_v37 }
 0x189   :  { %v476_v39 = vpop.f32.mrf.mxu2 }
 0x18a   :  { %v477_v49 = vadd.f32 %v1247_v28, %v476_v39 }
 0x18c   :  { %v538_v56 = vmax.f32 %v477_v49, 0.0 }
 0x18e   :  { %v570_v4 = vpack.c.bf16 %v538_v56, %v538_v56 }
 0x18f   :  { %v513_v40 = vpop.f32.mrf.mxu3 }
 0x190   :  { %v696_v16 = vunpack.c.l.b16 %v570_v4  ;;  %v514_v29 = vadd.f32 %v1247_v28, %v513_v40  ;;  %v507_v40 = vadd.f32 %v1247_v28, %v1273_v33 }
 0x191   :  { %v478_v41 = vpop.f32.mrf.mxu2 }
 0x192   :  { %v479_v47 = vadd.f32 %v1247_v28, %v478_v41  ;;  %v550_v60 = vmax.f32 %v507_v40, 0.0 }
 0x194   :  { %v539_v53 = vmax.f32 %v479_v47, 0.0  ;;  %v553_v47 = vmax.f32 %v514_v29, 0.0  ;;  %v582_v1 = vpack.c.bf16 %v550_v60, %v550_v60 }
 0x196   :  { %v571_v62 = vpack.c.bf16 %v539_v53, %v539_v53  ;;  %v585_v55 = vpack.c.bf16 %v553_v47, %v553_v47 }
 0x197   :  { %v516_v43 = vpop.f32.mrf.mxu3 }
 0x198   :  { %v697_v11 = vunpack.c.l.b16 %v571_v62  ;;  %v517_v22 = vadd.f32 %v1247_v28, %v516_v43  ;;  %v692_v43 = vunpack.c.l.b16 %v566_v42 }
 0x199   :  { %v481_v45 = vpop.f32.mrf.mxu2 }
 0x19a   :  { %v482_v46 = vadd.f32 %v1247_v28, %v481_v45  ;;  %v706_v25 = vpack.c.b16 %v697_v11, %v696_v16  ;;  %v554_v7 = vmax.f32 %v517_v22, 0.0  ;;  %v705_v45 = vpack.c.b16 %v695_v19, %v694_v27 }
 0x19c   :  { %v540_v50 = vmax.f32 %v482_v46, 0.0  ;;  %v509_v46 = vadd.f32 %v1247_v28, %v508_v36  ;;  %v586_v52 = vpack.c.bf16 %v554_v7, %v554_v7 }
 0x19e   :  { %v572_v58 = vpack.c.bf16 %v540_v50, %v540_v50  ;;  %v704_v50 = vpack.c.b16 %v693_v32, %v692_v43  ;;  %v628_v61 = vunpack.c.l.b16 %v586_v52  ;;  %v1059_v43 = vld [vmem:[%s1357_s1 + $0x58] sm:$0xff] }
 0x19f   :  { %v518_v48 = vpop.f32.mrf.mxu3 }
 0x1a0   :  { %v698_v5 = vunpack.c.l.b16 %v572_v58  ;;  %v519_v17 = vadd.f32 %v1247_v28, %v518_v48 }
 0x1a1   :  { %v483_v21 = vpop.f32.mrf.mxu2 }
 0x1a2   :  { %v484_v54 = vadd.f32 %v1247_v28, %v483_v21  ;;  %v555_v57 = vmax.f32 %v519_v17, 0.0  ;;  %v552_v21 = vmax.f32 %v512_v31, 0.0 }
 0x1a4   :  { %v541_v59 = vmax.f32 %v484_v54, 0.0  ;;  %v587_v48 = vpack.c.bf16 %v555_v57, %v555_v57  ;;  %v551_v54 = vmax.f32 %v509_v46, 0.0  ;;  %v584_v36 = vpack.c.bf16 %v552_v21, %v552_v21  ;;  %v1058_v46 = vld [vmem:[%s1357_s1 + $0x50] sm:$0xff] }
 0x1a6   :  { %v573_v63 = vpack.c.bf16 %v541_v59, %v541_v59  ;;  %v629_v56 = vunpack.c.l.b16 %v587_v48  ;;  %v583_v62 = vpack.c.bf16 %v551_v54, %v551_v54  ;;  %v1069_v48 = vld [vmem:[%s1359_s2 + $0x3] ss:$0 sm:$0xff] }
 0x1a7   :  { %v521_v2 = vpop.f32.mrf.mxu3 }
 0x1a8   :  { %v699_v6 = vunpack.c.l.b16 %v573_v63  ;;  %v522_v13 = vadd.f32 %v1247_v28, %v521_v2  ;;  %v627_v63 = vunpack.c.l.b16 %v585_v55  ;;  %v638_v33 = vpack.c.b16 %v629_v56, %v628_v61 }
 0x1a9   :  { %v1285_v9 = vpop.f32.mrf.mxu2  ;;  %v626_v2 = vunpack.c.l.b16 %v584_v36  ;;  %v625_v3 = vunpack.c.l.b16 %v583_v62 }
 0x1aa   :  { %v707_v12 = vpack.c.b16 %v699_v6, %v698_v5  ;;  %v556_v23 = vmax.f32 %v522_v13, 0.0  ;;  %v624_v6 = vunpack.c.l.b16 %v582_v1  ;;  %v487_v13 = vadd.f32 %v1247_v28, %v1285_v9 }
 0x1ab   :  { %v637_v4 = vpack.c.b16 %v627_v63, %v626_v2  ;;  %v1071_v2 = vld [vmem:[%s1359_s2 + $0x5] ss:$0 sm:$0xff] }
 0x1ac   :  { %716 = vmatpush.bf16.msra.mxu0 %v707_v12  ;;  %v588_v39 = vpack.c.bf16 %v556_v23, %v556_v23  ;;  %v542_v17 = vmax.f32 %v487_v13, 0.0 }
 0x1ae   :  { %v630_v53 = vunpack.c.l.b16 %v588_v39  ;;  %v574_v22 = vpack.c.bf16 %v542_v17, %v542_v17 }
 0x1af   :  { %v523_v26 = vpop.f32.mrf.mxu3 }
 0x1b0   :  { %v524_v30 = vadd.f32 %v1247_v28, %v523_v26  ;;  %717 = vmatpush.bf16.msra.mxu0 %v706_v25  ;;  %v616_v25 = vunpack.c.l.b16 %v574_v22  ;;  %v93_v26 = vld [vmem:[%s1357_s1 + $0x10] sm:$0x1] }
 0x1b1   :  { %v488_v35 = vpop.f32.mrf.mxu2  ;;  %v807_v27 = vunpack.c.l.b16 %v93_v26 }
 0x1b2   :  { %v557_v41 = vmax.f32 %v524_v30, 0.0  ;;  %v489_v11 = vadd.f32 %v1247_v28, %v488_v35  ;;  %v1051_v30 = vld [vmem:[%s1357_s1 + $0x8] sm:$0xff] }
 0x1b3   :  { %v809_v29 = vpack.c.b16 %v807_v27, %v807_v27 }
 0x1b4   :  { %v589_v49 = vpack.c.bf16 %v557_v41, %v557_v41  ;;  %718 = vmatpush.bf16.msra.mxu0 %v705_v45  ;;  %v543_v15 = vmax.f32 %v489_v11, 0.0 }
 0x1b5   :  { %v816_v57 = vsel %vm226_vm0, %v809_v29, 0 }
 0x1b6   :  { %v631_v37 = vunpack.c.l.b16 %v589_v49 }
 0x1b8   :  { %719 = vmatpush.bf16.msra.mxu0 %v704_v50  ;;  %v639_v58 = vpack.c.b16 %v631_v37, %v630_v53  ;;  %v1061_v53 = vld [vmem:[%s1357_s1 + $0x68] sm:$0xff]  ;;  %v1060_v37 = vld [vmem:[%s1357_s1 + $0x60] sm:$0xff] }
 0x1b9   :  { %v491_v59 = vpop.f32.mrf.mxu2 }
 0x1ba   :  { %648 = vmatpush.bf16.msrb.mxu3 %v639_v58  ;;  %v492_v8 = vadd.f32 %v1247_v28, %v491_v59  ;;  %v1070_v58 = vld [vmem:[%s1359_s2 + $0x4] ss:$0 sm:$0xff] }
 0x1bc   :  { %720 = vmatpush.bf16.msra.mxu0 %v1270_v24  ;;  %v636_v24 = vpack.c.b16 %v625_v3, %v624_v6  ;;  %v544_v14 = vmax.f32 %v492_v8, 0.0 }
 0x1be   :  { %649 = vmatpush.bf16.msrb.mxu3 %v638_v33  ;;  %v576_v18 = vpack.c.bf16 %v544_v14, %v544_v14 }
 0x1c0   :  { %721 = vmatpush.bf16.msra.mxu0 %v1262_v0  ;;  %v1054_v0 = vld [vmem:[%s1357_s1 + $0x30] sm:$0xff]  ;;  %v618_v23 = vunpack.c.l.b16 %v576_v18 }
 0x1c1   :  { %v493_v5 = vpop.f32.mrf.mxu2 }
 0x1c2   :  { %v494_v10 = vadd.f32 %v1247_v28, %v493_v5  ;;  %650 = vmatpush.bf16.msrb.mxu3 %v637_v4 }
 0x1c4   :  { %v545_v12 = vmax.f32 %v494_v10, 0.0  ;;  %722 = vmatpush.bf16.msra.mxu0 %v1257_v51  ;;  %v575_v51 = vpack.c.bf16 %v543_v15, %v543_v15 }
 0x1c6   :  { %651 = vmatpush.bf16.msrb.mxu3 %v636_v24  ;;  %v577_v16 = vpack.c.bf16 %v545_v12, %v545_v12  ;;  %v617_v28 = vunpack.c.l.b16 %v575_v51 }
 0x1c8   :  { %723 = vmatpush.bf16.msra.mxu0 %v1253_v38  ;;  %v619_v19 = vunpack.c.l.b16 %v577_v16  ;;  %v632_v42 = vpack.c.b16 %v617_v28, %v616_v25  ;;  %v1055_v38 = vld [vmem:[%s1357_s1 + $0x38] sm:$0xff] }
 0x1ca   :  { %652 = vmatpush.bf16.msrb.mxu3 %v1275_v34  ;;  %v633_v9 = vpack.c.b16 %v619_v19, %v618_v23  ;;  %v1057_v34 = vld [vmem:[%s1357_s1 + $0x48] sm:$0xff] }
 0x1cb   :  { %724 = vmatmul.bf16.vlgmr.msra.gmra.mxu0 %v1054_v0 }
 0x1cc   :  { %794 = vmatpush.bf16.msrb.mxu0 %v1059_v43 }
 0x1ce   :  { %653 = vmatpush.bf16.msrb.mxu3 %v1267_v20  ;;  %v1056_v20 = vld [vmem:[%s1357_s1 + $0x40] sm:$0xff] }
 0x1d0   :  { %795 = vmatpush.bf16.msrb.mxu0 %v1058_v46 }
 0x1d2   :  { %654 = vmatpush.bf16.msrb.mxu3 %v633_v9 }
 0x1d4   :  { %866 = vmatpush.bf16.msra.mxu0 %v1061_v53 }
 0x1d6   :  { %655 = vmatpush.bf16.msrb.mxu3 %v632_v42 }
 0x1d8   :  { %867 = vmatpush.bf16.msra.mxu0 %v1060_v37 }
 0x1d9   :  { %656 = vmatmul.bf16.vlgmr.msrb.gmra.mxu3 %v1055_v38 }
 0x1da   :  { %758 = vmatpush.bf16.msra.mxu3 %v1057_v34 }
 0x1de   :  { %759 = vmatpush.bf16.msra.mxu3 %v1056_v20 }
 0x1e2   :  { %824 = vmatpush.bf16.msrb.mxu3 %v816_v57 }
 0x1e6   :  { %825 = vmatpush.bf16.msrb.mxu3 %v1051_v30 }
 0x248   :  { %v725_v32 = vpop.f32.mrf.mxu0 }
 0x250   :  { %v727_v7 = vpop.f32.mrf.mxu0 }
 0x25c   :  { %v657_v31 = vpop.f32.mrf.mxu3 }
 0x25d   :  { %v726_v39 = vadd.f32 %v725_v32, %v657_v31 }
 0x264   :  { %v659_v35 = vpop.f32.mrf.mxu3 }
 0x265   :  { %v728_v41 = vadd.f32 %v727_v7, %v659_v35 }
 0x267   :  { %v730_v45 = vpack.c.bf16 %v728_v41, %v726_v39 }
 0x269   :  { %1009 = vmatmul.msk.bf16.vlgmr.msra.gmra.mxu3 %vm388_vm6, %v730_v45 }
 0x279   :  { %1023 = vmatmul.msk.bf16.vlgmr.msrb.gmra.mxu3 %vm811_vm7, %v1184_v44 }
 0x2ec   :  { %v761_v47 = vpop.f32.mrf.mxu3 }
 0x2ed   :  { %v762_v49 = vadd.f32 %v1069_v48, %v761_v47 }
 0x2ef   :  { %v766_v21 = vmax.f32 %v762_v49, 0.0 }
 0x2f4   :  { %v763_v40 = vpop.f32.mrf.mxu3 }
 0x2f5   :  { %v764_v50 = vadd.f32 %v1069_v48, %v763_v40 }
 0x2f7   :  { %v767_v44 = vmax.f32 %v764_v50, 0.0 }
 0x2f9   :  { %v768_v52 = vpack.c.bf16 %v767_v44, %v766_v21 }
 0x2fb   :  { %1018 = vmatmul.msk.bf16.vlgmr.msrb.gmra.mxu0 %vm388_vm6, %v768_v52 }
 0x2fc   :  { %v827_v54 = vpop.f32.mrf.mxu3 }
 0x304   :  { %v829_v59 = vpop.f32.mrf.mxu3 }
 0x378   :  { %v797_v55 = vpop.f32.mrf.mxu0 }
 0x379   :  { %v828_v56 = vadd.f32 %v827_v54, %v797_v55 }
 0x37b   :  { %v834_v36 = vadd.f32 %v1070_v58, %v828_v56 }
 0x37d   :  { %v836_v63 = vmax.f32 %v834_v36, 0.0 }
 0x380   :  { %v799_v60 = vpop.f32.mrf.mxu0 }
 0x381   :  { %v830_v61 = vadd.f32 %v829_v59, %v799_v60 }
 0x383   :  { %v835_v62 = vadd.f32 %v1070_v58, %v830_v61 }
 0x385   :  { %v837_v33 = vmax.f32 %v835_v62, 0.0 }
 0x387   :  { %v838_v1 = vpack.c.bf16 %v837_v33, %v836_v63 }
 0x389   :  { %1032 = vmatmul.msk.bf16.vlgmr.msra.gmra.mxu0 %vm388_vm6, %v838_v1 }
 0x406   :  { %v869_v3 = vpop.f32.mrf.mxu0 }
 0x407   :  { %v870_v4 = vadd.f32 %v1071_v2, %v869_v3 }
 0x409   :  { %874 = vst [vmem:[%s1360_s3] sm:$0xff] %v870_v4 }
 0x40e   :  { %v871_v5 = vpop.f32.mrf.mxu0 }
 0x40f   :  { %v872_v6 = vadd.f32 %v1071_v2, %v871_v5 }
 0x411   :  { %875 = vst [vmem:[%s1360_s3 + $0x8] sm:$0xff] %v872_v6 }

</bundles_post_ra>
